<compile_context>
chip_gen: v6e
topology: v6e:2x2x1
jax: 0.10.0
libtpu: 0.0.40
codegen_flags: <defaults>
</compile_context>

<pallas_src>
import jax
import jax.numpy as jnp
import numpy as np
from jax import lax
from jax.experimental import pallas as pl
from jax.experimental.pallas import tpu as pltpu

_EPS = 1e-5


# ----------------------------------------------------------------------------- kernel

def _make_residual_kernel(B, H, W, Cin, Cout, use_1x1conv):
    Hp = H + 2                       # rows per image in the H-padded slab
    R = B * Hp                       # total slab rows
    Zr = R - 2                       # conv-output rows (incl. 2*(B-1) junk seam rows)
    Lin, Lout = W * Cin, W * Cout    # lane widths
    inv_count = 1.0 / float(B * H * W)

    def kernel(*refs):
        if use_1x1conv:
            xs_ref, wk1_ref, wk2_ref, w3b_ref, aux_ref, out_ref, y1p_ref = refs
        else:
            xs_ref, wk1_ref, wk2_ref, aux_ref, out_ref, y1p_ref = refs
            w3b_ref = None

        # 0/1 row mask over the Zr conv-output rows: 1 on real (b, h) rows, 0 on the
        # 2*(B-1) junk rows that straddle image boundaries (excluded from BN stats and
        # zeroed before being written into the padded y1 slab).
        rr = lax.broadcasted_iota(jnp.int32, (Zr, 1), 0)
        mask = jnp.zeros((Zr, 1), jnp.float32)
        for b in range(B):
            mask = mask + jnp.where((rr >= b * Hp) & (rr < b * Hp + H), 1.0, 0.0)

        def conv3x3(src_ref, wk_ref):
            # src_ref: (R, L_in) H-padded lane-dense slab (bf16)
            # wk_ref:  (3, L_in, L_out) block-Toeplitz weights (bf16), one per kh tap.
            acc = jnp.dot(src_ref[0:Zr, :], wk_ref[0], preferred_element_type=jnp.float32)
            acc = acc + jnp.dot(src_ref[1:1 + Zr, :], wk_ref[1],
                                preferred_element_type=jnp.float32)
            acc = acc + jnp.dot(src_ref[2:2 + Zr, :], wk_ref[2],
                                preferred_element_type=jnp.float32)
            return acc

        def lane_group_allsum(v):
            # v: (1, Lout) per-(w, c) values -> per-channel total broadcast to every lane,
            # via a log2(W) roll-and-add butterfly over the W groups of Cout lanes (XLU).
            shift = Cout
            while shift < Lout:
                v = v + pltpu.roll(v, shift, axis=1)
                shift *= 2
            return v

        def batchnorm(z, g_lane, b_lane):
            # Train-mode BN, single pass: sum and sum-of-squares together, biased variance.
            zm = z * mask
            s1 = lane_group_allsum(jnp.sum(zm, axis=0, keepdims=True))
            s2 = lane_group_allsum(jnp.sum(zm * z, axis=0, keepdims=True))
            mean = s1 * inv_count
            var = s2 * inv_count - mean * mean
            scale = g_lane * lax.rsqrt(var + _EPS)
            return z * scale + (b_lane - mean * scale)

        # ---- stage 1: conv1 + BN1 + ReLU (conv bias cancelled by BN -> omitted) ----
        z1 = conv3x3(xs_ref, wk1_ref)
        y1 = jnp.maximum(batchnorm(z1, aux_ref[0:1, :], aux_ref[1:2, :]), 0.0)

        # ---- y1 -> padded bf16 slab (never leaves VMEM). Zero only the halo:
        #      outer pad rows explicitly, seam pad rows via the mask multiply. ----
        y1p_ref[0:1, :] = jnp.zeros((1, Lout), jnp.bfloat16)
        y1p_ref[R - 1:R, :] = jnp.zeros((1, Lout), jnp.bfloat16)
        y1p_ref[1:R - 1, :] = (y1 * mask).astype(jnp.bfloat16)

        # ---- stage 2: conv2 + BN2 ----
        z2 = conv3x3(y1p_ref, wk2_ref)
        y2 = batchnorm(z2, aux_ref[2:3, :], aux_ref[3:4, :])

        # ---- shortcut + add + ReLU ----
        if use_1x1conv:
            sc = jnp.dot(xs_ref[1:1 + Zr, :], w3b_ref[...],
                         preferred_element_type=jnp.float32) + aux_ref[4:5, :]
        else:
            sc = xs_ref[1:1 + Zr, :].astype(jnp.float32)   # identity (Cin == Cout)

        y = jnp.maximum(y2 + sc, 0.0)

        # Lane-dense (B*H, W*Cout) output: drop the per-image pad/junk rows.
        for b in range(B):
            out_ref[b * H:(b + 1) * H, :] = y[b * Hp:b * Hp + H, :]

    return kernel


# ----------------------------------------------------------------------------- wrapper

def _toeplitz_3x3(w_hwio, W):
    """(3,3,Cin,Cout) HWIO -> (3, W*Cin, W*Cout) block-Toeplitz over the width axis.

    Block (w_in, w_out) of tap kh equals w[kh, w_in - w_out + 1] when that kw is in range;
    out-of-range taps are simply absent, which implements the W zero-padding.
    """
    _, _, Cin, Cout = w_hwio.shape
    E = np.zeros((3, W, W), np.float32)
    for kw in range(3):
        for w_out in range(W):
            w_in = w_out + kw - 1
            if 0 <= w_in < W:
                E[kw, w_in, w_out] = 1.0
    wk = jnp.einsum("kab,hkio->haibo", E, w_hwio)      # exact: one-hot selection
    return wk.reshape(3, W * Cin, W * Cout)


def _block_diag_1x1(w_io, W):
    """(Cin, Cout) 1x1 weight -> (W*Cin, W*Cout) block-diagonal lane-dense weight."""
    Cin, Cout = w_io.shape
    return jnp.einsum("ab,io->aibo", np.eye(W, dtype=np.float32),
                      w_io).reshape(W * Cin, W * Cout)


def _lane_tile(p, W):
    """(1, C) per-channel vector -> (1, W*C) lane-dense (lane = w*C + c), f32."""
    return jnp.tile(p.reshape(1, -1).astype(jnp.float32), (1, W))


def _full_block(shape):
    zeros = (0,) * len(shape)
    return pl.BlockSpec(shape, lambda i: zeros)


def residual_pallas(x_nchw, params, use_1x1conv):
    x = jnp.transpose(x_nchw, (0, 2, 3, 1)).astype(jnp.float32)     # NCHW -> NHWC
    B, H, W, Cin = x.shape
    Cout = params["w1"].shape[-1]
    assert W & (W - 1) == 0, "W must be a power of two (roll-based channel reduction)"
    if not use_1x1conv:
        assert Cin == Cout, "identity shortcut requires input_channels == num_channels"
    Hp = H + 2
    Lin, Lout = W * Cin, W * Cout

    # H-padded lane-dense activation slab (bf16 MXU operand); W padding lives in the weights.
    xs = jnp.pad(x, ((0, 0), (1, 1), (0, 0), (0, 0)))
    xs = xs.reshape(B * Hp, Lin).astype(jnp.bfloat16)

    wk1 = _toeplitz_3x3(params["w1"], W).astype(jnp.bfloat16)       # (3, Lin,  Lout)
    wk2 = _toeplitz_3x3(params["w2"], W).astype(jnp.bfloat16)       # (3, Lout, Lout)

    # Packed per-lane params: [g1, be1, g2, be2, (b3)]. Conv biases b1/b2 are dropped:
    # they are cancelled exactly by the train-mode BN mean subtraction.
    aux_rows = [_lane_tile(params["g1"], W), _lane_tile(params["be1"], W),
                _lane_tile(params["g2"], W), _lane_tile(params["be2"], W)]
    args = [xs, wk1, wk2]
    if use_1x1conv:
        args.append(_block_diag_1x1(params["w3"], W).astype(jnp.bfloat16))
        aux_rows.append(_lane_tile(params["b3"], W))
    aux = jnp.concatenate(aux_rows, axis=0)
    args.append(aux)

    Zr = B * Hp - 2
    flops = 2 * Zr * Lin * Lout * 3 + 2 * Zr * Lout * Lout * 3
    if use_1x1conv:
        flops += 2 * Zr * Lin * Lout
    bytes_accessed = int(sum(int(np.prod(a.shape)) * a.dtype.itemsize for a in args)
                         + B * H * Lout * 4)

    out2d = pl.pallas_call(
        _make_residual_kernel(B, H, W, Cin, Cout, use_1x1conv),
        out_shape=jax.ShapeDtypeStruct((B * H, Lout), jnp.float32),
        grid=(1,),
        in_specs=[_full_block(a.shape) for a in args],
        out_specs=_full_block((B * H, Lout)),
        scratch_shapes=[pltpu.VMEM((B * Hp, Lout), jnp.bfloat16)],   # padded y1 slab
        compiler_params=pltpu.CompilerParams(dimension_semantics=("arbitrary",)),
        cost_estimate=pl.CostEstimate(flops=int(flops), transcendentals=2 * Lout,
                                      bytes_accessed=bytes_accessed),
    )(*args)

    return jnp.transpose(out2d.reshape(B, H, W, Cout), (0, 3, 1, 2))  # NHWC -> NCHW


residual_pallas_jit = jax.jit(residual_pallas, static_argnames=("use_1x1conv",))


# ----------------------------------------------------------------------------- reference

def residual_reference(x_nchw, params, use_1x1conv):
    x = jnp.transpose(x_nchw, (0, 2, 3, 1)).astype(jnp.float32)

    def conv3x3(inp, w, b):
        y = lax.conv_general_dilated(
            inp, w, window_strides=(1, 1), padding=((1, 1), (1, 1)),
            dimension_numbers=("NHWC", "HWIO", "NHWC"),
            precision=lax.Precision.HIGHEST)
        return y + b.reshape(1, 1, 1, -1)

    def bn(inp, g, be):
        mean = jnp.mean(inp, axis=(0, 1, 2), keepdims=True)
        var = jnp.mean((inp - mean) ** 2, axis=(0, 1, 2), keepdims=True)
        return (inp - mean) * lax.rsqrt(var + _EPS) * g.reshape(1, 1, 1, -1) + be.reshape(1, 1, 1, -1)

    y = jax.nn.relu(bn(conv3x3(x, params["w1"], params["b1"]), params["g1"], params["be1"]))
    y = bn(conv3x3(y, params["w2"], params["b2"]), params["g2"], params["be2"])
    if use_1x1conv:
        w3 = params["w3"].reshape(1, 1, *params["w3"].shape)
        sc = lax.conv_general_dilated(
            x, w3, window_strides=(1, 1), padding="VALID",
            dimension_numbers=("NHWC", "HWIO", "NHWC"),
            precision=lax.Precision.HIGHEST) + params["b3"].reshape(1, 1, 1, -1)
    else:
        sc = x
    out = jax.nn.relu(y + sc)
    return jnp.transpose(out, (0, 3, 1, 2))


# ----------------------------------------------------------------------------- params

def init_params(key, cin, cout, use_1x1conv):
    ks = jax.random.split(key, 12)
    f32 = jnp.float32
    p = {
        # conv biases b1/b2 exist to match the PyTorch module; the kernel omits them
        # (cancelled by train-mode BN), the reference keeps them.
        "w1": jax.random.normal(ks[0], (3, 3, cin, cout), f32) / np.sqrt(9 * cin),
        "b1": 0.1 * jax.random.normal(ks[1], (1, cout), f32),
        "g1": 1.0 + 0.1 * jax.random.normal(ks[2], (1, cout), f32),
        "be1": 0.1 * jax.random.normal(ks[3], (1, cout), f32),
        "w2": jax.random.normal(ks[4], (3, 3, cout, cout), f32) / np.sqrt(9 * cout),
        "b2": 0.1 * jax.random.normal(ks[5], (1, cout), f32),
        "g2": 1.0 + 0.1 * jax.random.normal(ks[6], (1, cout), f32),
        "be2": 0.1 * jax.random.normal(ks[7], (1, cout), f32),
    }
    if use_1x1conv:
        p["w3"] = jax.random.normal(ks[8], (cin, cout), f32) / np.sqrt(cin)
        p["b3"] = 0.1 * jax.random.normal(ks[9], (1, cout), f32)
    return p


# ----------------------------------------------------------------------------- main

if __name__ == "__main__":
    key = jax.random.PRNGKey(0)
    k_a, k_b, k_xa, k_xb = jax.random.split(key, 4)

    # bf16 MXU operands => ~1e-2-level differences vs. the f32 reference; loosen tolerance.
    RTOL = ATOL = 5e-2

    # Config A: projection shortcut (use_1x1conv=True), Cin != Cout, strides=1
    B, Cin, Cout, H, W = 2, 4, 8, 16, 16
    params_a = init_params(k_a, Cin, Cout, use_1x1conv=True)
    x_a = jax.random.normal(k_xa, (B, Cin, H, W), jnp.float32)
    out_a = jax.block_until_ready(residual_pallas_jit(x_a, params_a, use_1x1conv=True))
    ref_a = residual_reference(x_a, params_a, use_1x1conv=True)
    np.testing.assert_allclose(np.asarray(out_a), np.asarray(ref_a), rtol=RTOL, atol=ATOL)

    # Config B: identity shortcut (use_1x1conv=False), Cin == Cout, strides=1
    C = 8
    params_b = init_params(k_b, C, C, use_1x1conv=False)
    x_b = jax.random.normal(k_xb, (B, C, H, W), jnp.float32)
    out_b = jax.block_until_ready(residual_pallas_jit(x_b, params_b, use_1x1conv=False))
    ref_b = residual_reference(x_b, params_b, use_1x1conv=False)
    np.testing.assert_allclose(np.asarray(out_b), np.asarray(ref_b), rtol=RTOL, atol=ATOL)

    print("KERNEL_OK")
</pallas_src>

<mosaic_0001>
module attributes {stable_mosaic.version = 11 : i64} {
  func.func @kernel(%arg0: i32, %arg1: memref<36x64xbf16, #tpu.memory_space<vmem>>, %arg2: memref<3x64x128xbf16, #tpu.memory_space<vmem>>, %arg3: memref<3x128x128xbf16, #tpu.memory_space<vmem>>, %arg4: memref<64x128xbf16, #tpu.memory_space<vmem>>, %arg5: memref<5x128xf32, #tpu.memory_space<vmem>>, %arg6: memref<32x128xf32, #tpu.memory_space<vmem>>, %arg7: memref<36x128xbf16, #tpu.memory_space<vmem>>) attributes {dimension_semantics = [#tpu.dimension_semantics<arbitrary>], iteration_bounds = array<i64: 1>, scalar_prefetch = 0 : i64, scratch_operands = 1 : i64, tpu.core_type = #tpu.core_type<tc>, window_params = [{pipeline_mode = #tpu.pipeline_mode<synchronous>, transform_indices = @transform_0, window_bounds = array<i64: 36, 64>}, {pipeline_mode = #tpu.pipeline_mode<synchronous>, transform_indices = @transform_1, window_bounds = array<i64: 3, 64, 128>}, {pipeline_mode = #tpu.pipeline_mode<synchronous>, transform_indices = @transform_2, window_bounds = array<i64: 3, 128, 128>}, {pipeline_mode = #tpu.pipeline_mode<synchronous>, transform_indices = @transform_3, window_bounds = array<i64: 64, 128>}, {pipeline_mode = #tpu.pipeline_mode<synchronous>, transform_indices = @transform_4, window_bounds = array<i64: 5, 128>}, {pipeline_mode = #tpu.pipeline_mode<synchronous>, transform_indices = @transform_5, window_bounds = array<i64: 32, 128>}]} {
    %0 = tpu.iota {dimensions = array<i32: 0>} : vector<34x1xi32>
    %cst = arith.constant 0.000000e+00 : f32
    %1 = vector.broadcast %cst : f32 to vector<34x1xf32>
    %c0_i32 = arith.constant 0 : i32
    %2 = vector.broadcast %c0_i32 : i32 to vector<34x1xi32>
    %3 = arith.cmpi sge, %0, %2 : vector<34x1xi32>
    %c16_i32 = arith.constant 16 : i32
    %4 = vector.broadcast %c16_i32 : i32 to vector<34x1xi32>
    %5 = arith.cmpi slt, %0, %4 : vector<34x1xi32>
    %6 = arith.andi %3, %5 : vector<34x1xi1>
    %cst_0 = arith.constant 1.000000e+00 : f32
    %cst_1 = arith.constant 0.000000e+00 : f32
    %7 = vector.broadcast %cst_0 : f32 to vector<34x1xf32>
    %8 = vector.broadcast %cst_1 : f32 to vector<34x1xf32>
    %9 = arith.select %6, %7, %8 : vector<34x1xi1>, vector<34x1xf32>
    %10 = arith.addf %1, %9 : vector<34x1xf32>
    %c18_i32 = arith.constant 18 : i32
    %11 = vector.broadcast %c18_i32 : i32 to vector<34x1xi32>
    %12 = arith.cmpi sge, %0, %11 : vector<34x1xi32>
    %c34_i32 = arith.constant 34 : i32
    %13 = vector.broadcast %c34_i32 : i32 to vector<34x1xi32>
    %14 = arith.cmpi slt, %0, %13 : vector<34x1xi32>
    %15 = arith.andi %12, %14 : vector<34x1xi1>
    %cst_2 = arith.constant 1.000000e+00 : f32
    %cst_3 = arith.constant 0.000000e+00 : f32
    %16 = vector.broadcast %cst_2 : f32 to vector<34x1xf32>
    %17 = vector.broadcast %cst_3 : f32 to vector<34x1xf32>
    %18 = arith.select %15, %16, %17 : vector<34x1xi1>, vector<34x1xf32>
    %19 = arith.addf %10, %18 : vector<34x1xf32>
    %c0 = arith.constant 0 : index
    %c0_4 = arith.constant 0 : index
    %20 = vector.load %arg1[%c0, %c0_4] : memref<36x64xbf16, #tpu.memory_space<vmem>>, vector<34x64xbf16>
    %c0_5 = arith.constant 0 : index
    %c0_6 = arith.constant 0 : index
    %c0_7 = arith.constant 0 : index
    %21 = vector.load %arg2[%c0_5, %c0_6, %c0_7] : memref<3x64x128xbf16, #tpu.memory_space<vmem>>, vector<1x64x128xbf16>
    %22 = vector.shape_cast %21 : vector<1x64x128xbf16> to vector<64x128xbf16>
    %cst_8 = arith.constant dense<0.000000e+00> : vector<34x128xf32>
    %23 = tpu.matmul %20, %22, %cst_8 {dimension_numbers = #tpu.dot_dimension_numbers<[1], [0], [0], [1], [0, 0, 1, 1], [], []>} : vector<34x64xbf16>, vector<64x128xbf16>, vector<34x128xf32> -> vector<34x128xf32>
    %c1 = arith.constant 1 : index
    %c0_9 = arith.constant 0 : index
    %24 = vector.load %arg1[%c1, %c0_9] : memref<36x64xbf16, #tpu.memory_space<vmem>>, vector<34x64xbf16>
    %c1_10 = arith.constant 1 : index
    %c0_11 = arith.constant 0 : index
    %c0_12 = arith.constant 0 : index
    %25 = vector.load %arg2[%c1_10, %c0_11, %c0_12] : memref<3x64x128xbf16, #tpu.memory_space<vmem>>, vector<1x64x128xbf16>
    %26 = vector.shape_cast %25 : vector<1x64x128xbf16> to vector<64x128xbf16>
    %cst_13 = arith.constant dense<0.000000e+00> : vector<34x128xf32>
    %27 = tpu.matmul %24, %26, %cst_13 {dimension_numbers = #tpu.dot_dimension_numbers<[1], [0], [0], [1], [0, 0, 1, 1], [], []>} : vector<34x64xbf16>, vector<64x128xbf16>, vector<34x128xf32> -> vector<34x128xf32>
    %28 = arith.addf %23, %27 : vector<34x128xf32>
    %c2 = arith.constant 2 : index
    %c0_14 = arith.constant 0 : index
    %29 = vector.load %arg1[%c2, %c0_14] : memref<36x64xbf16, #tpu.memory_space<vmem>>, vector<34x64xbf16>
    %c2_15 = arith.constant 2 : index
    %c0_16 = arith.constant 0 : index
    %c0_17 = arith.constant 0 : index
    %30 = vector.load %arg2[%c2_15, %c0_16, %c0_17] : memref<3x64x128xbf16, #tpu.memory_space<vmem>>, vector<1x64x128xbf16>
    %31 = vector.shape_cast %30 : vector<1x64x128xbf16> to vector<64x128xbf16>
    %cst_18 = arith.constant dense<0.000000e+00> : vector<34x128xf32>
    %32 = tpu.matmul %29, %31, %cst_18 {dimension_numbers = #tpu.dot_dimension_numbers<[1], [0], [0], [1], [0, 0, 1, 1], [], []>} : vector<34x64xbf16>, vector<64x128xbf16>, vector<34x128xf32> -> vector<34x128xf32>
    %33 = arith.addf %28, %32 : vector<34x128xf32>
    %c0_19 = arith.constant 0 : index
    %c0_20 = arith.constant 0 : index
    %34 = vector.load %arg5[%c0_19, %c0_20] : memref<5x128xf32, #tpu.memory_space<vmem>>, vector<1x128xf32>
    %c1_21 = arith.constant 1 : index
    %c0_22 = arith.constant 0 : index
    %35 = vector.load %arg5[%c1_21, %c0_22] : memref<5x128xf32, #tpu.memory_space<vmem>>, vector<1x128xf32>
    %36 = vector.broadcast %19 : vector<34x1xf32> to vector<34x128xf32>
    %37 = arith.mulf %33, %36 : vector<34x128xf32>
    %cst_23 = arith.constant dense<0.000000e+00> : vector<128xf32>
    %38 = vector.multi_reduction <add>, %37, %cst_23 [0] : vector<34x128xf32> to vector<128xf32>
    %39 = vector.shape_cast %38 : vector<128xf32> to vector<1x128xf32>
    %c8_i32 = arith.constant 8 : i32
    %40 = tpu.dynamic_rotate %39 by %c8_i32 dim 1 : vector<1x128xf32>, i32 -> vector<1x128xf32>
    %41 = arith.addf %39, %40 : vector<1x128xf32>
    %c16_i32_24 = arith.constant 16 : i32
    %42 = tpu.dynamic_rotate %41 by %c16_i32_24 dim 1 : vector<1x128xf32>, i32 -> vector<1x128xf32>
    %43 = arith.addf %41, %42 : vector<1x128xf32>
    %c32_i32 = arith.constant 32 : i32
    %44 = tpu.dynamic_rotate %43 by %c32_i32 dim 1 : vector<1x128xf32>, i32 -> vector<1x128xf32>
    %45 = arith.addf %43, %44 : vector<1x128xf32>
    %c64_i32 = arith.constant 64 : i32
    %46 = tpu.dynamic_rotate %45 by %c64_i32 dim 1 : vector<1x128xf32>, i32 -> vector<1x128xf32>
    %47 = arith.addf %45, %46 : vector<1x128xf32>
    %48 = arith.mulf %37, %33 : vector<34x128xf32>
    %cst_25 = arith.constant dense<0.000000e+00> : vector<128xf32>
    %49 = vector.multi_reduction <add>, %48, %cst_25 [0] : vector<34x128xf32> to vector<128xf32>
    %50 = vector.shape_cast %49 : vector<128xf32> to vector<1x128xf32>
    %c8_i32_26 = arith.constant 8 : i32
    %51 = tpu.dynamic_rotate %50 by %c8_i32_26 dim 1 : vector<1x128xf32>, i32 -> vector<1x128xf32>
    %52 = arith.addf %50, %51 : vector<1x128xf32>
    %c16_i32_27 = arith.constant 16 : i32
    %53 = tpu.dynamic_rotate %52 by %c16_i32_27 dim 1 : vector<1x128xf32>, i32 -> vector<1x128xf32>
    %54 = arith.addf %52, %53 : vector<1x128xf32>
    %c32_i32_28 = arith.constant 32 : i32
    %55 = tpu.dynamic_rotate %54 by %c32_i32_28 dim 1 : vector<1x128xf32>, i32 -> vector<1x128xf32>
    %56 = arith.addf %54, %55 : vector<1x128xf32>
    %c64_i32_29 = arith.constant 64 : i32
    %57 = tpu.dynamic_rotate %56 by %c64_i32_29 dim 1 : vector<1x128xf32>, i32 -> vector<1x128xf32>
    %58 = arith.addf %56, %57 : vector<1x128xf32>
    %cst_30 = arith.constant 0.001953125 : f32
    %59 = vector.broadcast %cst_30 : f32 to vector<1x128xf32>
    %60 = arith.mulf %47, %59 : vector<1x128xf32>
    %cst_31 = arith.constant 0.001953125 : f32
    %61 = vector.broadcast %cst_31 : f32 to vector<1x128xf32>
    %62 = arith.mulf %58, %61 : vector<1x128xf32>
    %63 = arith.mulf %60, %60 : vector<1x128xf32>
    %64 = arith.subf %62, %63 : vector<1x128xf32>
    %cst_32 = arith.constant 9.99999974E-6 : f32
    %65 = vector.broadcast %cst_32 : f32 to vector<1x128xf32>
    %66 = arith.addf %64, %65 : vector<1x128xf32>
    %67 = math.rsqrt %66 : vector<1x128xf32>
    %68 = arith.mulf %34, %67 : vector<1x128xf32>
    %69 = vector.broadcast %68 : vector<1x128xf32> to vector<34x128xf32>
    %70 = arith.mulf %33, %69 : vector<34x128xf32>
    %71 = arith.mulf %60, %68 : vector<1x128xf32>
    %72 = arith.subf %35, %71 : vector<1x128xf32>
    %73 = vector.broadcast %72 : vector<1x128xf32> to vector<34x128xf32>
    %74 = arith.addf %70, %73 : vector<34x128xf32>
    %cst_33 = arith.constant 0.000000e+00 : f32
    %75 = vector.broadcast %cst_33 : f32 to vector<34x128xf32>
    %76 = arith.maximumf %74, %75 : vector<34x128xf32>
    %cst_34 = arith.constant 0.000000e+00 : bf16
    %77 = vector.broadcast %cst_34 : bf16 to vector<1x128xbf16>
    %c0_35 = arith.constant 0 : index
    %c0_36 = arith.constant 0 : index
    %78 = vector.load %arg7[%c0_35, %c0_36] : memref<36x128xbf16, #tpu.memory_space<vmem>>, vector<1x128xbf16>
    tpu.vector_store %arg7[%c0_35, %c0_36], %77 {strides = array<i32>} : memref<36x128xbf16, #tpu.memory_space<vmem>>, vector<1x128xbf16>,
    %cst_37 = arith.constant 0.000000e+00 : bf16
    %79 = vector.broadcast %cst_37 : bf16 to vector<1x128xbf16>
    %c35 = arith.constant 35 : index
    %c0_38 = arith.constant 0 : index
    %80 = vector.load %arg7[%c35, %c0_38] : memref<36x128xbf16, #tpu.memory_space<vmem>>, vector<1x128xbf16>
    tpu.vector_store %arg7[%c35, %c0_38], %79 {strides = array<i32>} : memref<36x128xbf16, #tpu.memory_space<vmem>>, vector<1x128xbf16>,
    %81 = vector.broadcast %19 : vector<34x1xf32> to vector<34x128xf32>
    %82 = arith.mulf %76, %81 : vector<34x128xf32>
    %83 = arith.truncf %82 : vector<34x128xf32> to vector<34x128xbf16>
    %c1_39 = arith.constant 1 : index
    %c0_40 = arith.constant 0 : index
    %84 = vector.load %arg7[%c1_39, %c0_40] : memref<36x128xbf16, #tpu.memory_space<vmem>>, vector<34x128xbf16>
    tpu.vector_store %arg7[%c1_39, %c0_40], %83 {strides = array<i32>} : memref<36x128xbf16, #tpu.memory_space<vmem>>, vector<34x128xbf16>,
    %c0_41 = arith.constant 0 : index
    %c0_42 = arith.constant 0 : index
    %85 = vector.load %arg7[%c0_41, %c0_42] : memref<36x128xbf16, #tpu.memory_space<vmem>>, vector<34x128xbf16>
    %c0_43 = arith.constant 0 : index
    %c0_44 = arith.constant 0 : index
    %c0_45 = arith.constant 0 : index
    %86 = vector.load %arg3[%c0_43, %c0_44, %c0_45] : memref<3x128x128xbf16, #tpu.memory_space<vmem>>, vector<1x128x128xbf16>
    %87 = vector.shape_cast %86 : vector<1x128x128xbf16> to vector<128x128xbf16>
    %cst_46 = arith.constant dense<0.000000e+00> : vector<34x128xf32>
    %88 = tpu.matmul %85, %87, %cst_46 {dimension_numbers = #tpu.dot_dimension_numbers<[1], [0], [0], [1], [0, 0, 1, 1], [], []>} : vector<34x128xbf16>, vector<128x128xbf16>, vector<34x128xf32> -> vector<34x128xf32>
    %c1_47 = arith.constant 1 : index
    %c0_48 = arith.constant 0 : index
    %89 = vector.load %arg7[%c1_47, %c0_48] : memref<36x128xbf16, #tpu.memory_space<vmem>>, vector<34x128xbf16>
    %c1_49 = arith.constant 1 : index
    %c0_50 = arith.constant 0 : index
    %c0_51 = arith.constant 0 : index
    %90 = vector.load %arg3[%c1_49, %c0_50, %c0_51] : memref<3x128x128xbf16, #tpu.memory_space<vmem>>, vector<1x128x128xbf16>
    %91 = vector.shape_cast %90 : vector<1x128x128xbf16> to vector<128x128xbf16>
    %cst_52 = arith.constant dense<0.000000e+00> : vector<34x128xf32>
    %92 = tpu.matmul %89, %91, %cst_52 {dimension_numbers = #tpu.dot_dimension_numbers<[1], [0], [0], [1], [0, 0, 1, 1], [], []>} : vector<34x128xbf16>, vector<128x128xbf16>, vector<34x128xf32> -> vector<34x128xf32>
    %93 = arith.addf %88, %92 : vector<34x128xf32>
    %c2_53 = arith.constant 2 : index
    %c0_54 = arith.constant 0 : index
    %94 = vector.load %arg7[%c2_53, %c0_54] : memref<36x128xbf16, #tpu.memory_space<vmem>>, vector<34x128xbf16>
    %c2_55 = arith.constant 2 : index
    %c0_56 = arith.constant 0 : index
    %c0_57 = arith.constant 0 : index
    %95 = vector.load %arg3[%c2_55, %c0_56, %c0_57] : memref<3x128x128xbf16, #tpu.memory_space<vmem>>, vector<1x128x128xbf16>
    %96 = vector.shape_cast %95 : vector<1x128x128xbf16> to vector<128x128xbf16>
    %cst_58 = arith.constant dense<0.000000e+00> : vector<34x128xf32>
    %97 = tpu.matmul %94, %96, %cst_58 {dimension_numbers = #tpu.dot_dimension_numbers<[1], [0], [0], [1], [0, 0, 1, 1], [], []>} : vector<34x128xbf16>, vector<128x128xbf16>, vector<34x128xf32> -> vector<34x128xf32>
    %98 = arith.addf %93, %97 : vector<34x128xf32>
    %c2_59 = arith.constant 2 : index
    %c0_60 = arith.constant 0 : index
    %99 = vector.load %arg5[%c2_59, %c0_60] : memref<5x128xf32, #tpu.memory_space<vmem>>, vector<1x128xf32>
    %c3 = arith.constant 3 : index
    %c0_61 = arith.constant 0 : index
    %100 = vector.load %arg5[%c3, %c0_61] : memref<5x128xf32, #tpu.memory_space<vmem>>, vector<1x128xf32>
    %101 = vector.broadcast %19 : vector<34x1xf32> to vector<34x128xf32>
    %102 = arith.mulf %98, %101 : vector<34x128xf32>
    %cst_62 = arith.constant dense<0.000000e+00> : vector<128xf32>
    %103 = vector.multi_reduction <add>, %102, %cst_62 [0] : vector<34x128xf32> to vector<128xf32>
    %104 = vector.shape_cast %103 : vector<128xf32> to vector<1x128xf32>
    %c8_i32_63 = arith.constant 8 : i32
    %105 = tpu.dynamic_rotate %104 by %c8_i32_63 dim 1 : vector<1x128xf32>, i32 -> vector<1x128xf32>
    %106 = arith.addf %104, %105 : vector<1x128xf32>
    %c16_i32_64 = arith.constant 16 : i32
    %107 = tpu.dynamic_rotate %106 by %c16_i32_64 dim 1 : vector<1x128xf32>, i32 -> vector<1x128xf32>
    %108 = arith.addf %106, %107 : vector<1x128xf32>
    %c32_i32_65 = arith.constant 32 : i32
    %109 = tpu.dynamic_rotate %108 by %c32_i32_65 dim 1 : vector<1x128xf32>, i32 -> vector<1x128xf32>
    %110 = arith.addf %108, %109 : vector<1x128xf32>
    %c64_i32_66 = arith.constant 64 : i32
    %111 = tpu.dynamic_rotate %110 by %c64_i32_66 dim 1 : vector<1x128xf32>, i32 -> vector<1x128xf32>
    %112 = arith.addf %110, %111 : vector<1x128xf32>
    %113 = arith.mulf %102, %98 : vector<34x128xf32>
    %cst_67 = arith.constant dense<0.000000e+00> : vector<128xf32>
    %114 = vector.multi_reduction <add>, %113, %cst_67 [0] : vector<34x128xf32> to vector<128xf32>
    %115 = vector.shape_cast %114 : vector<128xf32> to vector<1x128xf32>
    %c8_i32_68 = arith.constant 8 : i32
    %116 = tpu.dynamic_rotate %115 by %c8_i32_68 dim 1 : vector<1x128xf32>, i32 -> vector<1x128xf32>
    %117 = arith.addf %115, %116 : vector<1x128xf32>
    %c16_i32_69 = arith.constant 16 : i32
    %118 = tpu.dynamic_rotate %117 by %c16_i32_69 dim 1 : vector<1x128xf32>, i32 -> vector<1x128xf32>
    %119 = arith.addf %117, %118 : vector<1x128xf32>
    %c32_i32_70 = arith.constant 32 : i32
    %120 = tpu.dynamic_rotate %119 by %c32_i32_70 dim 1 : vector<1x128xf32>, i32 -> vector<1x128xf32>
    %121 = arith.addf %119, %120 : vector<1x128xf32>
    %c64_i32_71 = arith.constant 64 : i32
    %122 = tpu.dynamic_rotate %121 by %c64_i32_71 dim 1 : vector<1x128xf32>, i32 -> vector<1x128xf32>
    %123 = arith.addf %121, %122 : vector<1x128xf32>
    %cst_72 = arith.constant 0.001953125 : f32
    %124 = vector.broadcast %cst_72 : f32 to vector<1x128xf32>
    %125 = arith.mulf %112, %124 : vector<1x128xf32>
    %cst_73 = arith.constant 0.001953125 : f32
    %126 = vector.broadcast %cst_73 : f32 to vector<1x128xf32>
    %127 = arith.mulf %123, %126 : vector<1x128xf32>
    %128 = arith.mulf %125, %125 : vector<1x128xf32>
    %129 = arith.subf %127, %128 : vector<1x128xf32>
    %cst_74 = arith.constant 9.99999974E-6 : f32
    %130 = vector.broadcast %cst_74 : f32 to vector<1x128xf32>
    %131 = arith.addf %129, %130 : vector<1x128xf32>
    %132 = math.rsqrt %131 : vector<1x128xf32>
    %133 = arith.mulf %99, %132 : vector<1x128xf32>
    %134 = vector.broadcast %133 : vector<1x128xf32> to vector<34x128xf32>
    %135 = arith.mulf %98, %134 : vector<34x128xf32>
    %136 = arith.mulf %125, %133 : vector<1x128xf32>
    %137 = arith.subf %100, %136 : vector<1x128xf32>
    %138 = vector.broadcast %137 : vector<1x128xf32> to vector<34x128xf32>
    %139 = arith.addf %135, %138 : vector<34x128xf32>
    %c1_75 = arith.constant 1 : index
    %c0_76 = arith.constant 0 : index
    %140 = vector.load %arg1[%c1_75, %c0_76] : memref<36x64xbf16, #tpu.memory_space<vmem>>, vector<34x64xbf16>
    %c0_77 = arith.constant 0 : index
    %c0_78 = arith.constant 0 : index
    %141 = vector.load %arg4[%c0_77, %c0_78] : memref<64x128xbf16, #tpu.memory_space<vmem>>, vector<64x128xbf16>
    %cst_79 = arith.constant dense<0.000000e+00> : vector<34x128xf32>
    %142 = tpu.matmul %140, %141, %cst_79 {dimension_numbers = #tpu.dot_dimension_numbers<[1], [0], [0], [1], [0, 0, 1, 1], [], []>} : vector<34x64xbf16>, vector<64x128xbf16>, vector<34x128xf32> -> vector<34x128xf32>
    %c4 = arith.constant 4 : index
    %c0_80 = arith.constant 0 : index
    %143 = vector.load %arg5[%c4, %c0_80] : memref<5x128xf32, #tpu.memory_space<vmem>>, vector<1x128xf32>
    %144 = vector.broadcast %143 : vector<1x128xf32> to vector<34x128xf32>
    %145 = arith.addf %142, %144 : vector<34x128xf32>
    %146 = arith.addf %139, %145 : vector<34x128xf32>
    %cst_81 = arith.constant 0.000000e+00 : f32
    %147 = vector.broadcast %cst_81 : f32 to vector<34x128xf32>
    %148 = arith.maximumf %146, %147 : vector<34x128xf32>
    %149 = vector.extract_strided_slice %148 {offsets = [0, 0], sizes = [16, 128], strides = [1, 1]} : vector<34x128xf32> to vector<16x128xf32>
    %c0_82 = arith.constant 0 : index
    %c0_83 = arith.constant 0 : index
    %150 = vector.load %arg6[%c0_82, %c0_83] : memref<32x128xf32, #tpu.memory_space<vmem>>, vector<16x128xf32>
    tpu.vector_store %arg6[%c0_82, %c0_83], %149 {strides = array<i32>} : memref<32x128xf32, #tpu.memory_space<vmem>>, vector<16x128xf32>,
    %151 = vector.extract_strided_slice %148 {offsets = [18, 0], sizes = [16, 128], strides = [1, 1]} : vector<34x128xf32> to vector<16x128xf32>
    %c16 = arith.constant 16 : index
    %c0_84 = arith.constant 0 : index
    %152 = vector.load %arg6[%c16, %c0_84] : memref<32x128xf32, #tpu.memory_space<vmem>>, vector<16x128xf32>
    tpu.vector_store %arg6[%c16, %c0_84], %151 {strides = array<i32>} : memref<32x128xf32, #tpu.memory_space<vmem>>, vector<16x128xf32>,
    return
  }
  func.func @transform_0(%arg0: i32) -> (i32, i32) {
    %c0_i32 = arith.constant 0 : i32
    %c0_i32_0 = arith.constant 0 : i32
    %c0_i32_1 = arith.constant 0 : i32
    return %c0_i32, %c0_i32_0 : i32, i32
  }
  func.func @transform_1(%arg0: i32) -> (i32, i32, i32) {
    %c0_i32 = arith.constant 0 : i32
    %c0_i32_0 = arith.constant 0 : i32
    %c0_i32_1 = arith.constant 0 : i32
    %c0_i32_2 = arith.constant 0 : i32
    return %c0_i32, %c0_i32_0, %c0_i32_1 : i32, i32, i32
  }
  func.func @transform_2(%arg0: i32) -> (i32, i32, i32) {
    %c0_i32 = arith.constant 0 : i32
    %c0_i32_0 = arith.constant 0 : i32
    %c0_i32_1 = arith.constant 0 : i32
    %c0_i32_2 = arith.constant 0 : i32
    return %c0_i32, %c0_i32_0, %c0_i32_1 : i32, i32, i32
  }
  func.func @transform_3(%arg0: i32) -> (i32, i32) {
    %c0_i32 = arith.constant 0 : i32
    %c0_i32_0 = arith.constant 0 : i32
    %c0_i32_1 = arith.constant 0 : i32
    return %c0_i32, %c0_i32_0 : i32, i32
  }
  func.func @transform_4(%arg0: i32) -> (i32, i32) {
    %c0_i32 = arith.constant 0 : i32
    %c0_i32_0 = arith.constant 0 : i32
    %c0_i32_1 = arith.constant 0 : i32
    return %c0_i32, %c0_i32_0 : i32, i32
  }
  func.func @transform_5(%arg0: i32) -> (i32, i32) {
    %c0_i32 = arith.constant 0 : i32
    %c0_i32_0 = arith.constant 0 : i32
    %c0_i32_1 = arith.constant 0 : i32
    return %c0_i32, %c0_i32_0 : i32, i32
  }
}

</mosaic_0001>

<bundles_post_ra>
// kernel: residual_pallas.1
= control target key start
LH: loop header
LB: loop body
LE: loop exit
PB: predicated region body
PF: predicated region fallthrough
CT: control target
= control target key end

     0   :  { %v1716_v0 = vmov 0.0   ;;  %vm1717_vm0 = vmmov 0   ;;  %vm113_vm1 = vsmask.f32 7424  ;;  %vm161_vm2 = vcmask 523264   ;;  %s1719_s29 = smov 16   ;;  %s2165_s1 = inlined_call_operand.vmem [shape: bf16[3,64,128], index: 1, kind: input, shape index: {}]   ;;  %s2166_s0 = inlined_call_operand.vmem [shape: bf16[36,64], index: 0, kind: input, shape index: {}]   ;;  %s2167_s2 = inlined_call_operand.vmem [shape: bf16[3,128,128], index: 2, kind: input, shape index: {}]   ;;  %s2168_s4 = inlined_call_operand.vmem [shape: f32[5,128], index: 4, kind: input, shape index: {}]   ;;  %s2169_s3 = inlined_call_operand.vmem [shape: bf16[64,128], index: 3, kind: input, shape index: {}]   ;;  %s2170_s5 = inlined_call_operand.vmem [shape: f32[32,128], index: 5, kind: output, shape index: {}]  }
   0x1   :  { %1481 = vmatprep.subr.bf16.mxu0 %v1716_v0  ;;  %1501 = vmatprep.subr.bf16.mxu1 %v1716_v0  ;;  %v1659_v1 = vld [vmem:[%s2165_s1 + $0x38] sm:$0xff]   ;;  %v1661_v3 = vld [vmem:[%s2165_s1 + $0x30] sm:$0xff]   ;;  %v1663_v5 = vld [vmem:[%s2165_s1 + $0x28] sm:$0xff]   ;;  %vm330_vm3 = vcmask 1046528   ;;  %v21_v58 = vlaneseq  ;;  %vm440_vm6 = vcmask 1041408   ;;  %s1720_s30 = smov 32  }
   0x2   :  { %v1660_v2 = vld [vmem:[%s2165_s1 + $0x18] sm:$0xff]   ;;  %1489 = vmatprep.mubr.msk.bf16.mxu0 %vm1717_vm0, %v1716_v0  ;;  %1509 = vmatprep.mubr.msk.bf16.mxu1 %vm1717_vm0, %v1716_v0  ;;  %v1662_v4 = vld [vmem:[%s2165_s1 + $0x10] sm:$0xff]   ;;  %v1664_v6 = vld [vmem:[%s2165_s1 + $0x8] sm:$0xff]   ;;  %vm521_vm7 = vcmask 1040384   ;;  %vm522_vm8 = vsmask.f32 256 }
   0x3   :  { %1482 = vmatpush3.bf16.msra.mxu0 %v1659_v1  ;;  %1502 = vmatpush3.bf16.msra.mxu1 %v1660_v2  ;;  %v77_v7 = vld [vmem:[%s2166_s0] sm:$0xf]  ;;  %v78_v8 = vld [vmem:[%s2166_s0 + $0x4] sm:$0xf]  ;;  %v1789_v10 = vld [vmem:[%s2166_s0 + $0x8] sm:$0xff]   ;;  %v1861_v63 = vshrl.u32 %v21_v58, 7 }
   0x4   :  { %1483 = vmatprep.subr.bf16.mxu0 %v1716_v0  ;;  %1503 = vmatprep.subr.bf16.mxu1 %v1716_v0  ;;  %v1304_v9 = vcombine.low %v77_v7, %v78_v8  ;;  %v1665_v11 = vld [vmem:[%s2165_s1 + $0x20] sm:$0xff]   ;;  %v122_v15 = vshll.u32 %v1789_v10, 16  ;;  %v1671_v16 = vld [vmem:[%s2166_s0 + $0x10] ss:$0 sps:$4 sm:$0x33]   ;;  %v1669_v20 = vld [vmem:[%s2165_s1 + $0x58] sm:$0xff]  }
   0x5   :  { %v1666_v12 = vld [vmem:[%s2165_s1] sm:$0xff]   ;;  %v126_v21 = vshrl.u32 %v1789_v10, 16  ;;  %v130_v22 = vshll.u32 %v1671_v16, 16  ;;  %v1670_v24 = vld [vmem:[%s2165_s1 + $0x50] sm:$0xff]   ;;  %v1672_v28 = vld [vmem:[%s2165_s1 + $0x48] sm:$0xff]   ;;  %v134_v29 = vshrl.u32 %v1671_v16, 16 }
   0x6   :  { %v115_v13 = vshrl.u32 %v1304_v9, 16  ;;  %v117_v14 = vshll.u32 %v1304_v9, 16  ;;  %v124_v18 = vrot.slane %v122_v15, 1  ;;  %v1674_v30 = vld [vmem:[%s2165_s1 + $0x40] sm:$0xff]   ;;  %v332_v36 = vrot.slane %v1789_v10, 1  ;;  %s1718_s1 = smov 8   ;;  %vm523_vm10 = vmand %vm521_vm7, %vm522_vm8 }
   0x7   :  { %1484 = vmatpush3.bf16.msra.mxu0 %v1661_v3  ;;  %1504 = vmatpush3.bf16.msra.mxu1 %v1662_v4  ;;  %v132_v26 = vrot.slane %v130_v22, 1  ;;  %v317_v31 = vld [vmem:[%s2166_s0] sm:$0xe]  ;;  %v1673_v33 = vld [vmem:[%s2166_s0 + $0x10] ss:$0 sps:$4 sm:$0x11]  }
   0x8   :  { %1485 = vmatprep.subr.bf16.mxu0 %v1716_v0  ;;  %1505 = vmatprep.subr.bf16.mxu1 %v1716_v0  ;;  %v119_v17 = vrot.slane %v117_v14, 1  ;;  %v128_v25 = vor.u32 %v126_v21, %v124_v18  ;;  %v1330_v34 = vcombine.low %v317_v31, %v78_v8  ;;  %v334_v38 = vrot.slane %v1671_v16, 1  ;;  %s1721_s6 = smov 64  }
   0x9   :  { %v136_v32 = vor.u32 %v134_v29, %v132_v26  ;;  %v24_v4 = vadd.s32 16, %v1861_v63  ;;  %v26_v15 = vadd.s32 32, %v1861_v63  ;;  %vm527_vm9 = vcmask 1041409  }
   0xa   :  { %v120_v19 = vor.u32 %v119_v17, %v115_v13  ;;  %v133_v27 = vsel %vm113_vm1, %v128_v25, %v132_v26  ;;  %v331_v35 = vrot.slane %v1330_v34, 1  ;;  %v335_v39 = vsel %vm330_vm3, %v332_v36, %v334_v38 }
   0xb   :  { %1486 = vmatpush3.bf16.msra.mxu0 %v1663_v5  ;;  %1506 = vmatpush3.bf16.msra.mxu1 %v1664_v6  ;;  %vm54_vm4 = vcmp.ge.s32.totalorder %v24_v4, 18  ;;  %vm61_vm5 = vcmp.lt.s32.totalorder %v26_v15, 34  ;;  %v524_v4 = vld [vmem:[#allocation2] sm:$0x1]  ;;  %vm528_vm11 = vsmask.f32 7942 }
   0xc   :  { %1487 = vmatprep.subr.bf16.mxu0 %v1716_v0  ;;  %1507 = vmatprep.subr.bf16.mxu1 %v1716_v0  ;;  %v125_v23 = vsel %vm113_vm1, %v120_v19, %v124_v18  ;;  %v333_v37 = vsel %vm330_vm3, %v331_v35, %v332_v36  ;;  %vm529_vm12 = vmand %vm527_vm9, %vm528_vm11  ;;  %v1676_v15 = vld [vmem:[%s2167_s2 + $0x38] sm:$0xff]   ;;  %vm554_vm13 = vsmask.f32 4368  ;;  %vm604_vm14 = vcmask 1043456  }
   0xd   :  { %vm605_vm15 = vsmask.f32 7938 }
   0xe   :  { %vm1995_vm7 = vmand %vm604_vm14, %vm605_vm15 }
   0xf   :  { %1488 = vmatpush3.bf16.msra.mxu0 %v1665_v11  ;;  %1508 = vmatpush3.bf16.msra.mxu1 %v1666_v12  ;;  %v1867_v12 = vsel %vm54_vm4, 1.0, %v1716_v0  ;;  %vm1990_vm4 = vmor %vm522_vm8, %vm554_vm13 }
  0x10   :  { %1521 = vmatprep.subr.bf16.mxu0 %v1716_v0  ;;  %1541 = vmatprep.subr.bf16.mxu1 %v1716_v0 }
  0x12   :  { %1490 = vmatmul.mubr.msk.bf16.vlgmr.msra.gmra.mxu0 %vm161_vm2, %v125_v23  ;;  %1510 = vmatmul.mubr.msk.bf16.vlgmr.msra.gmra.mxu1 %vm161_vm2, %v1304_v9 }
  0x13   :  { %1522 = vmatpush3.bf16.msra.mxu0 %v1669_v20  ;;  %1493 = vmatprep.mubr.msk.bf16.mxu0 %vm1717_vm0, %v1716_v0 }
  0x14   :  { %1523 = vmatprep.subr.bf16.mxu0 %v1716_v0  ;;  %1513 = vmatprep.mubr.msk.bf16.mxu1 %vm1717_vm0, %v1716_v0 }
  0x17   :  { %1524 = vmatpush3.bf16.msra.mxu0 %v1670_v24 }
  0x18   :  { %1525 = vmatprep.subr.bf16.mxu0 %v1716_v0 }
  0x1a   :  { %1494 = vmatmul.mubr.msk.bf16.gmra.mxu0 %vm161_vm2, %v133_v27  ;;  %1514 = vmatmul.mubr.msk.bf16.gmra.mxu1 %vm161_vm2, %v1789_v10 }
  0x1b   :  { %1526 = vmatpush3.bf16.msra.mxu0 %v1672_v28  ;;  %1497 = vmatprep.mubr.msk.bf16.mxu0 %vm1717_vm0, %v1716_v0 }
  0x1c   :  { %1517 = vmatprep.mubr.msk.bf16.mxu1 %vm1717_vm0, %v1716_v0  ;;  %1527 = vmatprep.subr.bf16.mxu0 %v1716_v0 }
  0x1f   :  { %1528 = vmatpush3.bf16.msra.mxu0 %v1674_v30  ;;  %v1886_v30 = vsel %vm61_vm5, 1.0, %v1716_v0  ;;  %vm614_vm5 = vsmask.f32 1280 }
  0x20   :  { %1569 = vmatprep.subr.bf16.mxu0 %v1716_v0  ;;  %vm615_vm8 = vmand %vm440_vm6, %vm614_vm5 }
  0x22   :  { %1498 = vmatmul.mubr.msk.bf16.gmra.mxu0 %vm161_vm2, %v136_v32  ;;  %1518 = vmatmul.mubr.msk.bf16.gmra.mxu1 %vm161_vm2, %v1673_v33 }
  0x23   :  { %1529 = vmatprep.mubr.msk.bf16.mxu0 %vm1717_vm0, %v1716_v0  ;;  %1557 = vmatprep.mubr.msk.bf16.mxu1 %vm1717_vm0, %v1716_v0 }
  0x2a   :  { %1530 = vmatmul.mubr.msk.bf16.vlgmr.msra.gmra.mxu0 %vm161_vm2, %v333_v37 }
  0x2b   :  { %1533 = vmatprep.mubr.msk.bf16.mxu0 %vm1717_vm0, %v1716_v0  ;;  %1570 = vmatpush3.bf16.msra.mxu0 %v1676_v15 }
  0x2c   :  { %1571 = vmatprep.subr.bf16.mxu0 %v1716_v0 }
  0x32   :  { %1534 = vmatmul.mubr.msk.bf16.gmra.mxu0 %vm161_vm2, %v335_v39 }
  0x33   :  { %1537 = vmatprep.mubr.msk.bf16.mxu0 %vm1717_vm0, %v1716_v0 }
  0x3a   :  { %1538 = vmatmul.mubr.msk.bf16.gmra.mxu0 %vm161_vm2, %v334_v38 }
  0x3b   :  { %1585 = vmatprep.mubr.msk.bf16.mxu0 %vm1717_vm0, %v1716_v0 }
  0xd2   :  { %v205_v40 = vpop.f32.mrf.mxu0  ;;  %v295_v41 = vpop.f32.mrf.mxu1 }
  0xd3   :  { %v296_v10 = vadd.f32 %v295_v41, %v205_v40 }
  0xd4   :  { %v1491_v42 = vpop.f32.mrf.mxu0  ;;  %v1511_v43 = vpop.f32.mrf.mxu1 }
  0xd6   :  { %v208_v44 = vpop.f32.mrf.mxu0  ;;  %v298_v45 = vpop.f32.mrf.mxu1 }
  0xd7   :  { %v299_v7 = vadd.f32 %v298_v45, %v208_v44 }
  0xd8   :  { %v1492_v46 = vpop.f32.mrf.mxu0  ;;  %v1512_v47 = vpop.f32.mrf.mxu1 }
  0xda   :  { %v213_v48 = vpop.f32.mrf.mxu0  ;;  %v303_v49 = vpop.f32.mrf.mxu1 }
  0xdb   :  { %v304_v9 = vadd.f32 %v303_v49, %v213_v48 }
  0xdc   :  { %v1495_v50 = vpop.f32.mrf.mxu0  ;;  %v1515_v51 = vpop.f32.mrf.mxu1 }
  0xde   :  { %v216_v52 = vpop.f32.mrf.mxu0  ;;  %v306_v53 = vpop.f32.mrf.mxu1 }
  0xdf   :  { %v307_v19 = vadd.f32 %v306_v53, %v216_v52 }
  0xe0   :  { %v1496_v54 = vpop.f32.mrf.mxu0  ;;  %v1516_v55 = vpop.f32.mrf.mxu1 }
  0xe2   :  { %v221_v56 = vpop.f32.mrf.mxu0  ;;  %v311_v57 = vpop.f32.mrf.mxu1 }
  0xe3   :  { %v312_v27 = vadd.f32 %v311_v57, %v221_v56 }
  0xe4   :  { %v1499_v59 = vpop.f32.mrf.mxu0  ;;  %v1519_v60 = vpop.f32.mrf.mxu1 }
  0xe6   :  { %v224_v61 = vpop.f32.mrf.mxu0  ;;  %v314_v62 = vpop.f32.mrf.mxu1 }
  0xe8   :  { %v1500_v1 = vpop.f32.mrf.mxu0  ;;  %v1520_v2 = vpop.f32.mrf.mxu1 }
  0xea   :  { %v403_v3 = vpop.f32.mrf.mxu0 }
  0xeb   :  { %v1872_v16 = vadd.f32 %v403_v3, %v296_v10 }
  0xec   :  { %v1531_v5 = vpop.f32.mrf.mxu0 }
  0xed   :  { %v461_v22 = vmul.f32 %v1872_v16, %v1872_v16  ;;  %v525_v5 = vsel %vm523_vm10, 0, %v524_v4 }
  0xee   :  { %v406_v6 = vpop.f32.mrf.mxu0  ;;  %526 = vst [vmem:[#allocation2] sm:$0x1] %v525_v5 }
  0xef   :  { %v1864_v11 = vadd.f32 %v406_v6, %v299_v7  ;;  %v530_v6 = vld [vmem:[#allocation2 + $0x10] sm:$0x2] }
  0xf0   :  { %v1532_v8 = vpop.f32.mrf.mxu0  ;;  %v531_v7 = vsel %vm529_vm12, 0, %v530_v6 }
  0xf1   :  { %v462_v20 = vmul.f32 %v1864_v11, %v1864_v11  ;;  %v437_v23 = vadd.f32 %v1864_v11, %v1872_v16  ;;  %532 = vst [vmem:[#allocation2 + $0x10] sm:$0x2] %v531_v7 }
  0xf2   :  { %v411_v13 = vpop.f32.mrf.mxu0 }
  0xf3   :  { %v1869_v14 = vadd.f32 %v411_v13, %v304_v9  ;;  %v466_v28 = vadd.f32 %v462_v20, %v461_v22  ;;  %v1680_v20 = vld [vmem:[%s2167_s2 + $0x70] sm:$0xff]   ;;  %v1682_v22 = vld [vmem:[%s2167_s2 + $0x68] sm:$0xff]  }
  0xf4   :  { %v1535_v17 = vpop.f32.mrf.mxu0 }
  0xf5   :  { %v434_v18 = vmul.f32 %v1869_v14, %v1867_v12  ;;  %v1677_v17 = vld [vmem:[%s2167_s2 + $0x30] sm:$0xff]  }
  0xf6   :  { %v414_v21 = vpop.f32.mrf.mxu0  ;;  %1572 = vmatpush3.bf16.msra.mxu0 %v1677_v17 }
  0xf7   :  { %v463_v24 = vmul.f32 %v434_v18, %v1869_v14  ;;  %v1883_v25 = vadd.f32 %v414_v21, %v307_v19  ;;  %v438_v29 = vadd.f32 %v437_v23, %v434_v18  ;;  %v1678_v18 = vld [vmem:[%s2167_s2 + $0x78] sm:$0xff]   ;;  %1573 = vmatprep.subr.bf16.mxu0 %v1716_v0  ;;  %v1679_v19 = vld [vmem:[%s2167_s2 + $0x28] sm:$0xff]   ;;  %v1681_v21 = vld [vmem:[%s2167_s2 + $0x20] sm:$0xff]  }
  0xf8   :  { %v1536_v26 = vpop.f32.mrf.mxu0  ;;  %1542 = vmatpush3.bf16.msra.mxu1 %v1678_v18  ;;  %v1683_v23 = vld [vmem:[%s2167_s2 + $0x18] sm:$0xff]  }
  0xf9   :  { %v467_v33 = vadd.f32 %v466_v28, %v463_v24  ;;  %v464_v34 = vmul.f32 %v1883_v25, %v1883_v25  ;;  %v439_v37 = vadd.f32 %v438_v29, %v1883_v25  ;;  %1543 = vmatprep.subr.bf16.mxu1 %v1716_v0  ;;  %v1684_v24 = vld [vmem:[%s2167_s2 + $0x60] sm:$0xff]   ;;  %v1685_v26 = vld [vmem:[%s2167_s2 + $0x10] sm:$0xff]   ;;  %v1687_v28 = vld [vmem:[%s2167_s2 + $0x8] sm:$0xff]  }
  0xfa   :  { %v419_v31 = vpop.f32.mrf.mxu0  ;;  %1574 = vmatpush3.bf16.msra.mxu0 %v1679_v19  ;;  %v1688_v29 = vld [vmem:[%s2167_s2 + $0x50] sm:$0xff]  }
  0xfb   :  { %v1888_v32 = vadd.f32 %v419_v31, %v312_v27  ;;  %v468_v41 = vadd.f32 %v467_v33, %v464_v34  ;;  %1575 = vmatprep.subr.bf16.mxu0 %v1716_v0  ;;  %v1686_v27 = vld [vmem:[%s2167_s2 + $0x58] sm:$0xff]   ;;  %v1689_v31 = vld [vmem:[%s2167_s2] sm:$0xff]   ;;  %v1690_v33 = vld [vmem:[%s2167_s2 + $0x48] sm:$0xff]  }
  0xfc   :  { %v1539_v35 = vpop.f32.mrf.mxu0  ;;  %1544 = vmatpush3.bf16.msra.mxu1 %v1680_v20  ;;  %v1692_v34 = vld [vmem:[%s2167_s2 + $0x40] sm:$0xff]  }
  0xfd   :  { %v436_v36 = vmul.f32 %v1888_v32, %v1886_v30  ;;  %1545 = vmatprep.subr.bf16.mxu1 %v1716_v0 }
  0xfe   :  { %v422_v38 = vpop.f32.mrf.mxu0  ;;  %1576 = vmatpush3.bf16.msra.mxu0 %v1681_v21  ;;  %v607_v21 = vld [vmem:[#allocation2] sm:$0xf] }
  0xff   :  { %v441_v39 = vsel %vm440_vm6, %v436_v36, 0.0  ;;  %v465_v40 = vmul.f32 %v436_v36, %v1888_v32  ;;  %1577 = vmatprep.subr.bf16.mxu0 %v1716_v0 }
 0x100   :  { %v1540_v42 = vpop.f32.mrf.mxu0  ;;  %v442_v43 = vadd.f32 %v441_v39, %v439_v37  ;;  %1546 = vmatpush3.bf16.msra.mxu1 %v1682_v22 }
 0x101   :  { %v469_v44 = vsel %vm440_vm6, %v465_v40, 0.0  ;;  %1547 = vmatprep.subr.bf16.mxu1 %v1716_v0 }
 0x102   :  { %v470_v45 = vadd.f32 %v469_v44, %v468_v41  ;;  %v443_v46 = vrot.slane %v442_v43, 4  ;;  %1578 = vmatpush3.bf16.msra.mxu0 %v1683_v23  ;;  %v430_v44 = vld [vmem:[%s2168_s4] sm:$0x1] }
 0x103   :  { %1579 = vmatprep.subr.bf16.mxu0 %v1716_v0 }
 0x104   :  { %v444_v47 = vadd.f32 %v443_v46, %v442_v43  ;;  %v471_v48 = vrot.slane %v470_v45, 4  ;;  %1548 = vmatpush3.bf16.msra.mxu1 %v1684_v24 }
 0x105   :  { %1549 = vmatprep.subr.bf16.mxu1 %v1716_v0 }
 0x106   :  { %v445_v49 = vrot.slane %v444_v47, 2  ;;  %v472_v50 = vadd.f32 %v471_v48, %v470_v45  ;;  %1580 = vmatpush3.bf16.msra.mxu0 %v1685_v26  ;;  %v1975_v45 = vsub.s32 0, %v1861_v63  ;;  %v431_v48 = vld [vmem:[%s2168_s4 + $0x1] sm:$0x1] }
 0x107   :  { %1581 = vmatprep.subr.bf16.mxu0 %v1716_v0 }
 0x108   :  { %v446_v51 = vadd.f32 %v445_v49, %v444_v47  ;;  %v473_v52 = vrot.slane %v472_v50, 2  ;;  %1550 = vmatpush3.bf16.msra.mxu1 %v1686_v27 }
 0x109   :  { %1551 = vmatprep.subr.bf16.mxu1 %v1716_v0 }
 0x10a   :  { %v447_v53 = vrot.slane %v446_v51, 1  ;;  %v474_v54 = vadd.f32 %v473_v52, %v472_v50  ;;  %1582 = vmatpush3.bf16.msra.mxu0 %v1687_v28 }
 0x10b   :  { %1583 = vmatprep.subr.bf16.mxu0 %v1716_v0 }
 0x10c   :  { %v448_v55 = vadd.f32 %v447_v53, %v446_v51  ;;  %v475_v56 = vrot.slane %v474_v54, 1  ;;  %1552 = vmatpush3.bf16.msra.mxu1 %v1688_v29 }
 0x10d   :  { %1553 = vmatprep.subr.bf16.mxu1 %v1716_v0 }
 0x10e   :  { %449 = vrot.lane.b32.xlu0 %v448_v55, %s1718_s1  ;;  %v476_v57 = vadd.f32 %v475_v56, %v474_v54  ;;  %1584 = vmatpush3.bf16.msra.mxu0 %v1689_v31 }
 0x10f   :  { %1625 = vmatprep.subr.bf16.mxu0 %v1716_v0 }
 0x110   :  { %1554 = vmatpush3.bf16.msra.mxu1 %v1690_v33 }
 0x111   :  { %1555 = vmatprep.subr.bf16.mxu1 %v1716_v0 }
 0x112   :  { %477 = vrot.lane.b32.xlu0 %v476_v57, %s1718_s1 }
 0x114   :  { %1556 = vmatpush3.bf16.msra.mxu1 %v1692_v34 }
 0x115   :  { %1597 = vmatprep.subr.bf16.mxu1 %v1716_v0 }
 0x180   :  { %v450_v58 = vpop.permute.xlu0 %449 }
 0x181   :  { %v451_v59 = vadd.f32 %v450_v58, %v448_v55 }
 0x183   :  { %452 = vrot.lane.b32.xlu1 %v451_v59, %s1719_s29 }
 0x184   :  { %v478_v60 = vpop.permute.xlu0 %477 }
 0x185   :  { %v479_v61 = vadd.f32 %v478_v60, %v476_v57 }
 0x187   :  { %480 = vrot.lane.b32.xlu1 %v479_v61, %s1719_s29 }
 0x1f5   :  { %v453_v62 = vpop.permute.xlu1 %452 }
 0x1f6   :  { %v454_v1 = vadd.f32 %v453_v62, %v451_v59 }
 0x1f8   :  { %455 = vrot.lane.b32.xlu0 %v454_v1, %s1720_s30 }
 0x1f9   :  { %v481_v2 = vpop.permute.xlu1 %480 }
 0x1fa   :  { %v482_v3 = vadd.f32 %v481_v2, %v479_v61 }
 0x1fc   :  { %483 = vrot.lane.b32.xlu1 %v482_v3, %s1720_s30 }
 0x26a   :  { %v456_v8 = vpop.permute.xlu0 %455 }
 0x26b   :  { %v457_v9 = vadd.f32 %v456_v8, %v454_v1 }
 0x26d   :  { %458 = vrot.lane.b32.xlu0 %v457_v9, %s1721_s6 }
 0x26e   :  { %v484_v10 = vpop.permute.xlu1 %483 }
 0x26f   :  { %v485_v13 = vadd.f32 %v484_v10, %v482_v3 }
 0x271   :  { %486 = vrot.lane.b32.xlu1 %v485_v13, %s1721_s6 }
 0x2df   :  { %v459_v35 = vpop.permute.xlu0 %458 }
 0x2e0   :  { %v460_v36 = vadd.f32 %v459_v35, %v457_v9 }
 0x2e2   :  { %v489_v37 = vmul.f32 0.001953125, %v460_v36 }
 0x2e3   :  { %v487_v38 = vpop.permute.xlu1 %486 }
 0x2e4   :  { %v488_v39 = vadd.f32 %v487_v38, %v485_v13  ;;  %v491_v40 = vmul.f32 %v489_v37, %v489_v37 }
 0x2e6   :  { %v490_v41 = vmul.f32 0.001953125, %v488_v39  ;;  %v616_v39 = vld [vmem:[#allocation2 + $0x10] sm:$0x3] }
 0x2e8   :  { %v492_v42 = vsub.f32 %v490_v41, %v491_v40 }
 0x2ea   :  { %v493_v43 = vadd.f32 1e-05, %v492_v42 }
 0x2ec   :  { %1712 = vrsqrt.f32 %v493_v43 }
 0x2f9   :  { %v1713_v46 = vpop.eup %1712 }
 0x2fa   :  { %v495_v47 = vmul.f32 %v1713_v46, %v430_v44 }
 0x2fc   :  { %v499_v49 = vrot.slane %v495_v47, %v1975_v45  ;;  %v505_v50 = vmul.f32 %v495_v47, %v489_v37 }
 0x2fe   :  { %v506_v51 = vsub.f32 %v431_v48, %v505_v50  ;;  %v500_v52 = vmul.f32 %v499_v49, %v1872_v16  ;;  %v501_v53 = vmul.f32 %v499_v49, %v1864_v11  ;;  %v502_v54 = vmul.f32 %v499_v49, %v1869_v14 }
 0x2ff   :  { %v503_v55 = vmul.f32 %v499_v49, %v1883_v25  ;;  %v504_v56 = vmul.f32 %v499_v49, %v1888_v32 }
 0x300   :  { %v510_v63 = vrot.slane %v506_v51, %v1975_v45 }
 0x302   :  { %v511_v57 = vadd.f32 %v510_v63, %v500_v52  ;;  %v512_v58 = vadd.f32 %v510_v63, %v501_v53  ;;  %v513_v59 = vadd.f32 %v510_v63, %v502_v54  ;;  %v514_v60 = vadd.f32 %v510_v63, %v503_v55 }
 0x303   :  { %v515_v61 = vadd.f32 %v510_v63, %v504_v56 }
 0x304   :  { %v516_v62 = vmax.f32 %v511_v57, 0.0  ;;  %v517_v1 = vmax.f32 %v512_v58, 0.0  ;;  %v518_v2 = vmax.f32 %v513_v59, 0.0  ;;  %v519_v3 = vmax.f32 %v514_v60, 0.0  ;;  %v1694_v59 = vld [vmem:[%s2167_s2 + $0xb8] sm:$0xff]  }
 0x305   :  { %v520_v16 = vmax.f32 %v515_v61, 0.0 }
 0x306   :  { %v535_v11 = vmul.f32 %v518_v2, %v1867_v12  ;;  %v1415_v4 = vpack.c.bf16 %v516_v62, %v516_v62  ;;  %v1416_v14 = vpack.c.bf16 %v517_v1, %v517_v1  ;;  %v1418_v5 = vpack.c.bf16 %v519_v3, %v519_v3  ;;  %v1695_v62 = vld [vmem:[%s2167_s2 + $0xb0] sm:$0xff]  }
 0x307   :  { %v537_v25 = vmul.f32 %v520_v16, %v1886_v30  ;;  %v1697_v16 = vld [vmem:[%s2167_s2 + $0xa8] sm:$0xff]  }
 0x308   :  { %v1417_v32 = vpack.c.bf16 %v535_v11, %v535_v11  ;;  %v557_v6 = vshrl.u32 %v1415_v4, 16  ;;  %v565_v7 = vshrl.u32 %v1416_v14, 16  ;;  %v560_v9 = vshll.u32 %v1415_v4, 16 }
 0x309   :  { %v1419_v8 = vpack.c.bf16 %v537_v25, %v537_v25  ;;  %v583_v10 = vshrl.u32 %v1418_v5, 16  ;;  %v568_v18 = vshll.u32 %v1416_v14, 16  ;;  %v586_v28 = vshll.u32 %v1418_v5, 16  ;;  %v1699_v14 = vld [vmem:[%s2167_s2 + $0xa0] sm:$0xff]   ;;  %v1700_v25 = vld [vmem:[%s2167_s2 + $0x98] sm:$0xff]  }
 0x30a   :  { %v559_v15 = vrot.slane %v557_v6, 7  ;;  %v567_v17 = vrot.slane %v565_v7, 7  ;;  %v574_v19 = vshrl.u32 %v1417_v32, 16  ;;  %v577_v31 = vshll.u32 %v1417_v32, 16  ;;  %v1701_v6 = vld [vmem:[%s2167_s2 + $0x90] sm:$0xff]  }
 0x30b   :  { %v585_v22 = vrot.slane %v583_v10, 7  ;;  %v592_v23 = vshrl.u32 %v1419_v8, 16  ;;  %v595_v34 = vshll.u32 %v1419_v8, 16  ;;  %v1702_v8 = vld [vmem:[%s2167_s2 + $0x88] sm:$0xff]   ;;  %v1703_v10 = vld [vmem:[%s2167_s2 + $0x80] sm:$0xff]  }
 0x30c   :  { %v562_v24 = vor.u32 %v560_v9, %v559_v15  ;;  %v563_v26 = vrot.slane %v559_v15, 4  ;;  %v570_v27 = vor.u32 %v568_v18, %v567_v17  ;;  %v576_v29 = vrot.slane %v574_v19, 7 }
 0x30d   :  { %v594_v33 = vrot.slane %v592_v23, 7  ;;  %v572_v36 = vrot.slane %v567_v17, 4  ;;  %v588_v37 = vor.u32 %v586_v28, %v585_v22  ;;  %v590_v42 = vrot.slane %v585_v22, 4 }
 0x30e   :  { %v571_v35 = vsel %vm1990_vm4, %v563_v26, %v570_v27  ;;  %v608_v38 = vsel %vm1995_vm7, %v562_v24, %v607_v21  ;;  %v579_v40 = vor.u32 %v577_v31, %v576_v29  ;;  %v581_v41 = vrot.slane %v576_v29, 4 }
 0x30f   :  { %v597_v43 = vor.u32 %v595_v34, %v594_v33  ;;  %610 = vst [vmem:[#allocation2 + $0x4] sm:$0xf] %v571_v35  ;;  %609 = vst [vmem:[#allocation2] sm:$0xf] %v608_v38 }
 0x310   :  { %v580_v44 = vsel %vm1990_vm4, %v572_v36, %v579_v40  ;;  %v589_v46 = vsel %vm1990_vm4, %v581_v41, %v588_v37 }
 0x311   :  { %v598_v47 = vsel %vm1990_vm4, %v590_v42, %v597_v43  ;;  %611 = vst [vmem:[#allocation2 + $0x8] sm:$0xf] %v580_v44  ;;  %612 = vst [vmem:[#allocation2 + $0xc] sm:$0xf] %v589_v46 }
 0x312   :  { %v617_v48 = vsel %vm615_vm8, %v598_v47, %v616_v39 }
 0x313   :  { %618 = vst [vmem:[#allocation2 + $0x10] sm:$0x3] %v617_v48 }
 0x316   :  { %v619_v49 = vld [vmem:[#allocation2] sm:$0xf]  ;;  %v620_v50 = vld [vmem:[#allocation2 + $0x4] sm:$0xf] }
 0x317   :  { %v1359_v51 = vcombine.low %v619_v49, %v620_v50  ;;  %v911_v7 = vld [vmem:[#allocation2] sm:$0xe] }
 0x318   :  { %v1693_v52 = vld [vmem:[#allocation2 + $0x8] sm:$0xff]   ;;  %v1395_v9 = vcombine.low %v911_v7, %v620_v50 }
 0x319   :  { %1586 = vmatmul.mubr.bf16.vlgmr.msra.gmra.mxu0 %v1359_v51  ;;  %v674_v53 = vshll.u32 %v1359_v51, 16  ;;  %v679_v54 = vshll.u32 %v1693_v52, 16  ;;  %v672_v55 = vshrl.u32 %v1359_v51, 16  ;;  %v683_v1 = vshrl.u32 %v1693_v52, 16 }
 0x31a   :  { %1589 = vmatprep.mubr.msk.bf16.mxu0 %vm1717_vm0, %v1716_v0  ;;  %v1696_v56 = vld [vmem:[#allocation2 + $0x10] ss:$0 sps:$4 sm:$0x33]   ;;  %v932_v13 = vrot.slane %v1395_v9, 1  ;;  %v933_v15 = vrot.slane %v1693_v52, 1 }
 0x31b   :  { %v676_v63 = vrot.slane %v674_v53, 1  ;;  %v681_v57 = vrot.slane %v679_v54, 1  ;;  %v687_v61 = vshll.u32 %v1696_v56, 16  ;;  %v1698_v11 = vld [vmem:[#allocation2 + $0x10] ss:$0 sps:$4 sm:$0x11]  }
 0x31c   :  { %v691_v5 = vshrl.u32 %v1696_v56, 16  ;;  %v934_v17 = vsel %vm330_vm3, %v932_v13, %v933_v15  ;;  %v935_v18 = vrot.slane %v1696_v56, 1 }
 0x31d   :  { %v677_v58 = vor.u32 %v676_v63, %v672_v55  ;;  %v685_v2 = vor.u32 %v683_v1, %v681_v57  ;;  %v689_v3 = vrot.slane %v687_v61, 1 }
 0x31e   :  { %v936_v19 = vsel %vm330_vm3, %v933_v15, %v935_v18 }
 0x31f   :  { %v682_v60 = vsel %vm113_vm1, %v677_v58, %v681_v57  ;;  %v690_v4 = vsel %vm113_vm1, %v685_v2, %v689_v3  ;;  %v693_v32 = vor.u32 %v691_v5, %v689_v3 }
 0x320   :  { %1558 = vmatmul.mubr.bf16.vlgmr.msra.gmra.mxu1 %v682_v60 }
 0x321   :  { %1590 = vmatmul.mubr.bf16.gmra.mxu0 %v1693_v52  ;;  %1598 = vmatpush3.bf16.msra.mxu1 %v1694_v59 }
 0x322   :  { %1561 = vmatprep.mubr.msk.bf16.mxu1 %vm1717_vm0, %v1716_v0  ;;  %1599 = vmatprep.subr.bf16.mxu1 %v1716_v0 }
 0x323   :  { %1593 = vmatprep.mubr.msk.bf16.mxu0 %vm1717_vm0, %v1716_v0 }
 0x325   :  { %1600 = vmatpush3.bf16.msra.mxu1 %v1695_v62 }
 0x326   :  { %1601 = vmatprep.subr.bf16.mxu1 %v1716_v0 }
 0x328   :  { %1562 = vmatmul.mubr.bf16.gmra.mxu1 %v690_v4 }
 0x329   :  { %1594 = vmatmul.mubr.bf16.gmra.mxu0 %v1698_v11  ;;  %1602 = vmatpush3.bf16.msra.mxu1 %v1697_v16 }
 0x32a   :  { %1565 = vmatprep.mubr.msk.bf16.mxu1 %vm1717_vm0, %v1716_v0  ;;  %1603 = vmatprep.subr.bf16.mxu1 %v1716_v0 }
 0x32b   :  { %1633 = vmatprep.mubr.msk.bf16.mxu0 %vm1717_vm0, %v1716_v0 }
 0x32d   :  { %1604 = vmatpush3.bf16.msra.mxu1 %v1699_v14 }
 0x32e   :  { %1605 = vmatprep.subr.bf16.mxu1 %v1716_v0 }
 0x330   :  { %1566 = vmatmul.mubr.bf16.gmra.mxu1 %v693_v32 }
 0x331   :  { %1606 = vmatpush3.bf16.msra.mxu1 %v1700_v25  ;;  %1613 = vmatprep.mubr.msk.bf16.mxu1 %vm1717_vm0, %v1716_v0 }
 0x332   :  { %1607 = vmatprep.subr.bf16.mxu1 %v1716_v0 }
 0x335   :  { %1608 = vmatpush3.bf16.msra.mxu1 %v1701_v6 }
 0x336   :  { %1609 = vmatprep.subr.bf16.mxu1 %v1716_v0 }
 0x339   :  { %1610 = vmatpush3.bf16.msra.mxu1 %v1702_v8 }
 0x33a   :  { %1611 = vmatprep.subr.bf16.mxu1 %v1716_v0 }
 0x33d   :  { %1612 = vmatpush3.bf16.msra.mxu1 %v1703_v10 }
 0x33e   :  { %1645 = vmatprep.subr.bf16.mxu1 %v1716_v0 }
 0x340   :  { %1614 = vmatmul.mubr.bf16.vlgmr.msra.gmra.mxu1 %v934_v17 }
 0x341   :  { %1617 = vmatprep.mubr.msk.bf16.mxu1 %vm1717_vm0, %v1716_v0 }
 0x348   :  { %1618 = vmatmul.mubr.bf16.gmra.mxu1 %v936_v19 }
 0x349   :  { %1621 = vmatprep.mubr.msk.bf16.mxu1 %vm1717_vm0, %v1716_v0 }
 0x350   :  { %1622 = vmatmul.mubr.bf16.gmra.mxu1 %v935_v18 }
 0x351   :  { %1641 = vmatprep.mubr.msk.bf16.mxu1 %vm1717_vm0, %v1716_v0 }
 0x3d9   :  { %v889_v20 = vpop.f32.mrf.mxu0 }
 0x3db   :  { %v1587_v21 = vpop.f32.mrf.mxu0 }
 0x3dd   :  { %v892_v22 = vpop.f32.mrf.mxu0 }
 0x3df   :  { %v1588_v23 = vpop.f32.mrf.mxu0 }
 0x3e0   :  { %v779_v24 = vpop.f32.mrf.mxu1 }
 0x3e1   :  { %v897_v26 = vpop.f32.mrf.mxu0  ;;  %v890_v54 = vadd.f32 %v889_v20, %v779_v24 }
 0x3e2   :  { %v1559_v27 = vpop.f32.mrf.mxu1 }
 0x3e3   :  { %v1591_v28 = vpop.f32.mrf.mxu0 }
 0x3e4   :  { %v782_v29 = vpop.f32.mrf.mxu1 }
 0x3e5   :  { %v900_v31 = vpop.f32.mrf.mxu0  ;;  %v893_v51 = vadd.f32 %v892_v22, %v782_v29 }
 0x3e6   :  { %v1560_v33 = vpop.f32.mrf.mxu1 }
 0x3e7   :  { %v1592_v34 = vpop.f32.mrf.mxu0 }
 0x3e8   :  { %v787_v35 = vpop.f32.mrf.mxu1 }
 0x3e9   :  { %v905_v36 = vpop.f32.mrf.mxu0  ;;  %v898_v53 = vadd.f32 %v897_v26, %v787_v35 }
 0x3ea   :  { %v1563_v37 = vpop.f32.mrf.mxu1 }
 0x3eb   :  { %v1595_v38 = vpop.f32.mrf.mxu0  ;;  %v1705_v37 = vld [vmem:[%s2169_s3 + $0x18] sm:$0xff]  }
 0x3ec   :  { %v790_v39 = vpop.f32.mrf.mxu1  ;;  %v1710_v38 = vld [vmem:[%s2166_s0 + $0x8] sm:$0xff]   ;;  %1626 = vmatpush3.bf16.msra.mxu0 %v1705_v37  ;;  %1649 = vmatpush3.bf16.msra.mxu1 %v1705_v37 }
 0x3ed   :  { %v908_v40 = vpop.f32.mrf.mxu0  ;;  %v901_v60 = vadd.f32 %v900_v31, %v790_v39  ;;  %v1706_v39 = vld [vmem:[%s2169_s3 + $0x10] sm:$0xff]   ;;  %1627 = vmatprep.subr.bf16.mxu0 %v1716_v0  ;;  %1646 = vmatprep.subr.bf16.mxu1 %v1716_v0 }
 0x3ee   :  { %v1564_v41 = vpop.f32.mrf.mxu1 }
 0x3ef   :  { %v1596_v42 = vpop.f32.mrf.mxu0  ;;  %v1711_v41 = vld [vmem:[%s2166_s0 + $0x10] ss:$0 sps:$4 sm:$0x33]  }
 0x3f0   :  { %v795_v43 = vpop.f32.mrf.mxu1  ;;  %1628 = vmatpush3.bf16.msra.mxu0 %v1706_v39  ;;  %1650 = vmatpush3.bf16.msra.mxu1 %v1706_v39 }
 0x3f1   :  { %v906_v4 = vadd.f32 %v905_v36, %v795_v43  ;;  %v1709_v36 = vld [vmem:[%s2166_s0] sm:$0xff]   ;;  %1629 = vmatprep.subr.bf16.mxu0 %v1716_v0  ;;  %1647 = vmatprep.subr.bf16.mxu1 %v1716_v0 }
 0x3f2   :  { %v1567_v44 = vpop.f32.mrf.mxu1  ;;  %v1168_v40 = vshll.u32 %v1709_v36, 16 }
 0x3f3   :  { %v1707_v44 = vld [vmem:[%s2169_s3 + $0x8] sm:$0xff]  }
 0x3f4   :  { %v798_v46 = vpop.f32.mrf.mxu1  ;;  %1630 = vmatpush3.bf16.msra.mxu0 %v1707_v44  ;;  %1651 = vmatpush3.bf16.msra.mxu1 %v1707_v44 }
 0x3f5   :  { %v1166_v46 = vshrl.u32 %v1709_v36, 16  ;;  %1631 = vmatprep.subr.bf16.mxu0 %v1716_v0  ;;  %1648 = vmatprep.subr.bf16.mxu1 %v1716_v0 }
 0x3f6   :  { %v1568_v47 = vpop.f32.mrf.mxu1 }
 0x3f7   :  { %v1170_v47 = vrot.slane %v1168_v40, 1 }
 0x400   :  { %v1022_v48 = vpop.f32.mrf.mxu1 }
 0x401   :  { %v2069_v57 = vadd.f32 %v1022_v48, %v890_v54  ;;  %v1173_v48 = vshll.u32 %v1710_v38, 16 }
 0x402   :  { %v1615_v49 = vpop.f32.mrf.mxu1 }
 0x403   :  { %v1079_v1 = vmul.f32 %v2069_v57, %v2069_v57  ;;  %v1175_v54 = vrot.slane %v1173_v48, 1 }
 0x404   :  { %v1025_v50 = vpop.f32.mrf.mxu1 }
 0x405   :  { %v2065_v55 = vadd.f32 %v1025_v50, %v893_v51  ;;  %v1181_v51 = vshll.u32 %v1711_v41, 16 }
 0x406   :  { %v1616_v52 = vpop.f32.mrf.mxu1 }
 0x407   :  { %v1080_v61 = vmul.f32 %v2065_v55, %v2065_v55  ;;  %v1056_v2 = vadd.f32 %v2065_v55, %v2069_v57  ;;  %v1708_v52 = vld [vmem:[%s2169_s3] sm:$0xff]  }
 0x408   :  { %v1030_v63 = vpop.f32.mrf.mxu1  ;;  %1632 = vmatpush3.bf16.msra.mxu0 %v1708_v52  ;;  %1652 = vmatpush3.bf16.msra.mxu1 %v1708_v52 }
 0x409   :  { %v2067_v56 = vadd.f32 %v1030_v63, %v898_v53  ;;  %v1084_v14 = vadd.f32 %v1080_v61, %v1079_v1  ;;  %v1171_v53 = vor.u32 %v1170_v47, %v1166_v46  ;;  %v1185_v63 = vshrl.u32 %v1711_v41, 16 }
 0x40a   :  { %v1619_v58 = vpop.f32.mrf.mxu1 }
 0x40b   :  { %v1053_v59 = vmul.f32 %v2067_v56, %v1867_v12  ;;  %v1183_v58 = vrot.slane %v1181_v51, 1 }
 0x40c   :  { %v1033_v62 = vpop.f32.mrf.mxu1 }
 0x40d   :  { %v1081_v3 = vmul.f32 %v1053_v59, %v2067_v56  ;;  %v2080_v16 = vadd.f32 %v1033_v62, %v901_v60  ;;  %v1057_v5 = vadd.f32 %v1056_v2, %v1053_v59  ;;  %v1176_v59 = vsel %vm113_vm1, %v1171_v53, %v1175_v54 }
 0x40e   :  { %v1620_v11 = vpop.f32.mrf.mxu1  ;;  %v1177_v60 = vshrl.u32 %v1710_v38, 16  ;;  %v1187_v61 = vor.u32 %v1185_v63, %v1183_v58  ;;  %1634 = vmatmul.mubr.msk.bf16.vlgmr.msra.gmra.mxu0 %vm161_vm2, %v1176_v59  ;;  %v1404_v38 = vld [vmem:[%s2168_s4 + $0x4] ss:$0 sm:$0xff] }
 0x40f   :  { %v1085_v32 = vadd.f32 %v1084_v14, %v1081_v3  ;;  %v1082_v6 = vmul.f32 %v2080_v16, %v2080_v16  ;;  %v1058_v9 = vadd.f32 %v1057_v5, %v2080_v16  ;;  %1637 = vmatprep.mubr.msk.bf16.mxu0 %vm1717_vm0, %v1716_v0 }
 0x410   :  { %v1038_v12 = vpop.f32.mrf.mxu1  ;;  %v1179_v62 = vor.u32 %v1177_v60, %v1175_v54  ;;  %1642 = vmatmul.mubr.msk.bf16.vlgmr.msra.gmra.mxu1 %vm161_vm2, %v1187_v61 }
 0x411   :  { %v2082_v25 = vadd.f32 %v1038_v12, %v906_v4  ;;  %v1086_v17 = vadd.f32 %v1085_v32, %v1082_v6 }
 0x412   :  { %v1623_v7 = vpop.f32.mrf.mxu1  ;;  %v1184_v1 = vsel %vm113_vm1, %v1179_v62, %v1183_v58 }
 0x413   :  { %v1055_v8 = vmul.f32 %v2082_v25, %v1886_v30 }
 0x414   :  { %v1041_v10 = vpop.f32.mrf.mxu1 }
 0x415   :  { %v1059_v13 = vsel %vm440_vm6, %v1055_v8, 0.0  ;;  %v1083_v15 = vmul.f32 %v1055_v8, %v2082_v25 }
 0x416   :  { %v1060_v18 = vadd.f32 %v1059_v13, %v1058_v9  ;;  %v1624_v19 = vpop.f32.mrf.mxu1  ;;  %1638 = vmatmul.mubr.msk.bf16.gmra.mxu0 %vm161_vm2, %v1184_v1 }
 0x417   :  { %v1087_v20 = vsel %vm440_vm6, %v1083_v15, 0.0 }
 0x418   :  { %v1088_v21 = vadd.f32 %v1087_v20, %v1086_v17  ;;  %v1061_v22 = vrot.slane %v1060_v18, 4 }
 0x41a   :  { %v1062_v23 = vadd.f32 %v1061_v22, %v1060_v18  ;;  %v1089_v24 = vrot.slane %v1088_v21, 4 }
 0x41c   :  { %v1063_v26 = vrot.slane %v1062_v23, 2  ;;  %v1090_v27 = vadd.f32 %v1089_v24, %v1088_v21 }
 0x41e   :  { %v1064_v28 = vadd.f32 %v1063_v26, %v1062_v23  ;;  %v1091_v30 = vrot.slane %v1090_v27, 2 }
 0x420   :  { %v1065_v29 = vrot.slane %v1064_v28, 1  ;;  %v1092_v31 = vadd.f32 %v1091_v30, %v1090_v27 }
 0x422   :  { %v1066_v33 = vadd.f32 %v1065_v29, %v1064_v28  ;;  %v1093_v34 = vrot.slane %v1092_v31, 1 }
 0x424   :  { %1067 = vrot.lane.b32.xlu0 %v1066_v33, %s1718_s1  ;;  %v1094_v35 = vadd.f32 %v1093_v34, %v1092_v31  ;;  %v1049_v31 = vld [vmem:[%s2168_s4 + $0x2] sm:$0x1] }
 0x426   :  { %1095 = vrot.lane.b32.xlu1 %v1094_v35, %s1718_s1 }
 0x496   :  { %v1068_v42 = vpop.permute.xlu0 %1067 }
 0x497   :  { %v1069_v43 = vadd.f32 %v1068_v42, %v1066_v33 }
 0x498   :  { %v1096_v49 = vpop.permute.xlu1 %1095 }
 0x499   :  { %v1097_v50 = vadd.f32 %v1096_v49, %v1094_v35  ;;  %1070 = vrot.lane.b32.xlu0 %v1069_v43, %s1719_s29  ;;  %v1050_v35 = vld [vmem:[%s2168_s4 + $0x3] sm:$0x1] }
 0x49b   :  { %1098 = vrot.lane.b32.xlu1 %v1097_v50, %s1719_s29 }
 0x4ce   :  { %v1255_v0 = vpop.f32.mrf.mxu0 }
 0x4cf   :  { %v1256_v41 = vadd.f32 %v1404_v38, %v1255_v0 }
 0x4d0   :  { %v1635_v6 = vpop.f32.mrf.mxu0  ;;  %v1271_v15 = vpop.f32.mrf.mxu1 }
 0x4d1   :  { %v1272_v51 = vadd.f32 %v1404_v38, %v1271_v15 }
 0x4d2   :  { %v1258_v7 = vpop.f32.mrf.mxu0  ;;  %v1643_v18 = vpop.f32.mrf.mxu1 }
 0x4d3   :  { %v1259_v42 = vadd.f32 %v1404_v38, %v1258_v7 }
 0x4d4   :  { %v1636_v8 = vpop.f32.mrf.mxu0  ;;  %v1274_v19 = vpop.f32.mrf.mxu1 }
 0x4d6   :  { %v1263_v9 = vpop.f32.mrf.mxu0  ;;  %v1644_v20 = vpop.f32.mrf.mxu1 }
 0x4d7   :  { %v1264_v48 = vadd.f32 %v1404_v38, %v1263_v9 }
 0x4d8   :  { %v1639_v10 = vpop.f32.mrf.mxu0 }
 0x4da   :  { %v1266_v13 = vpop.f32.mrf.mxu0 }
 0x4db   :  { %v1267_v49 = vadd.f32 %v1404_v38, %v1266_v13 }
 0x4dc   :  { %v1640_v17 = vpop.f32.mrf.mxu0 }
 0x50b   :  { %v1071_v2 = vpop.permute.xlu0 %1070 }
 0x50c   :  { %v1072_v3 = vadd.f32 %v1071_v2, %v1069_v43 }
 0x50d   :  { %v1099_v11 = vpop.permute.xlu1 %1098 }
 0x50e   :  { %v1100_v4 = vadd.f32 %v1099_v11, %v1097_v50  ;;  %1073 = vrot.lane.b32.xlu0 %v1072_v3, %s1720_s30 }
 0x510   :  { %1101 = vrot.lane.b32.xlu1 %v1100_v4, %s1720_s30 }
 0x580   :  { %v1074_v14 = vpop.permute.xlu0 %1073 }
 0x581   :  { %v1075_v5 = vadd.f32 %v1074_v14, %v1072_v3 }
 0x582   :  { %v1102_v12 = vpop.permute.xlu1 %1101 }
 0x583   :  { %v1103_v32 = vadd.f32 %v1102_v12, %v1100_v4  ;;  %1076 = vrot.lane.b32.xlu0 %v1075_v5, %s1721_s6 }
 0x585   :  { %1104 = vrot.lane.b32.xlu1 %v1103_v32, %s1721_s6 }
 0x5f5   :  { %v1077_v21 = vpop.permute.xlu0 %1076 }
 0x5f6   :  { %v1078_v22 = vadd.f32 %v1077_v21, %v1075_v5 }
 0x5f7   :  { %v1105_v23 = vpop.permute.xlu1 %1104 }
 0x5f8   :  { %v1107_v24 = vmul.f32 0.001953125, %v1078_v22  ;;  %v1106_v26 = vadd.f32 %v1105_v23, %v1103_v32 }
 0x5fa   :  { %v1109_v27 = vmul.f32 %v1107_v24, %v1107_v24  ;;  %v1108_v28 = vmul.f32 0.001953125, %v1106_v26 }
 0x5fc   :  { %v1110_v30 = vsub.f32 %v1108_v28, %v1109_v27 }
 0x5fe   :  { %v1111_v29 = vadd.f32 1e-05, %v1110_v30 }
 0x600   :  { %1714 = vrsqrt.f32 %v1111_v29 }
 0x60d   :  { %v1715_v33 = vpop.eup %1714 }
 0x60e   :  { %v1113_v34 = vmul.f32 %v1715_v33, %v1049_v31 }
 0x610   :  { %v1123_v36 = vmul.f32 %v1113_v34, %v1107_v24  ;;  %v1117_v37 = vrot.slane %v1113_v34, %v1975_v45 }
 0x612   :  { %v1124_v39 = vsub.f32 %v1050_v35, %v1123_v36  ;;  %v1118_v40 = vmul.f32 %v1117_v37, %v2069_v57  ;;  %v1119_v44 = vmul.f32 %v1117_v37, %v2065_v55  ;;  %v1120_v46 = vmul.f32 %v1117_v37, %v2067_v56 }
 0x613   :  { %v1121_v47 = vmul.f32 %v1117_v37, %v2080_v16  ;;  %v1122_v50 = vmul.f32 %v1117_v37, %v2082_v25 }
 0x614   :  { %v1128_v43 = vrot.slane %v1124_v39, %v1975_v45 }
 0x616   :  { %v1129_v52 = vadd.f32 %v1128_v43, %v1118_v40  ;;  %v1130_v53 = vadd.f32 %v1128_v43, %v1119_v44  ;;  %v1131_v54 = vadd.f32 %v1128_v43, %v1120_v46  ;;  %v1132_v63 = vadd.f32 %v1128_v43, %v1121_v47 }
 0x617   :  { %v1133_v57 = vadd.f32 %v1128_v43, %v1122_v50 }
 0x618   :  { %v1277_v58 = vadd.f32 %v1256_v41, %v1129_v52  ;;  %v1278_v59 = vadd.f32 %v1259_v42, %v1130_v53  ;;  %v1279_v60 = vadd.f32 %v1264_v48, %v1131_v54  ;;  %v1280_v45 = vadd.f32 %v1267_v49, %v1132_v63 }
 0x619   :  { %v1281_v61 = vadd.f32 %v1272_v51, %v1133_v57 }
 0x61a   :  { %v1282_v55 = vmax.f32 %v1277_v58, 0.0  ;;  %v1283_v62 = vmax.f32 %v1278_v59, 0.0  ;;  %v1284_v56 = vmax.f32 %v1279_v60, 0.0  ;;  %v1285_v1 = vmax.f32 %v1280_v45, 0.0 }
 0x61b   :  { %v1286_v16 = vmax.f32 %v1281_v61, 0.0 }
 0x61c   :  { %1287 = vst [vmem:[%s2170_s5] sm:$0xff] %v1282_v55  ;;  %1288 = vst [vmem:[%s2170_s5 + $0x8] sm:$0xff] %v1283_v62 }
 0x61d   :  { %1289 = vst [vmem:[%s2170_s5 + $0xe] sm:$0xfc] %v1284_v56  ;;  %1290 = vst [vmem:[%s2170_s5 + $0x16] sm:$0xff] %v1285_v1 }
 0x61e   :  { %1291 = vst [vmem:[%s2170_s5 + $0x1e] sm:$0x3] %v1286_v16 }

</bundles_post_ra>
